<compile_context>
chip_gen: v5e
topology: v5e:2x2
jax: 0.10.0
libtpu: 0.0.40
codegen_flags: <defaults>
</compile_context>

<pallas_src>
import math

import jax
import jax.numpy as jnp
from jax.experimental import pallas as pl
from jax.experimental.pallas import tpu as pltpu


# ---------------------------------------------------------------------------
# Kernel: pure elementwise add of an (r_blk, l_blk) tile with the PE tile.
# ---------------------------------------------------------------------------
def _add_pe_kernel(x_ref, pe_ref, o_ref):
    # pe is already in the output dtype, so this is a single native-dtype add.
    o_ref[...] = (x_ref[...] + pe_ref[...]).astype(o_ref.dtype)


# ---------------------------------------------------------------------------
# Positional-encoding table (PyTorch semantics), computed once per shape.
# ---------------------------------------------------------------------------
def _pe_table(C, H, W):
    """(C, H, W) float32 table: channel c uses pattern c % 4."""
    max_dim = max(H, W)
    scale = -math.log(10000.0) / max_dim
    div = jnp.exp(jnp.arange(max_dim, dtype=jnp.float32) * scale)
    arg_y = jnp.arange(H, dtype=jnp.float32) * div[:H]   # elementwise, same index
    arg_x = jnp.arange(W, dtype=jnp.float32) * div[:W]
    slabs = jnp.stack(
        [
            jnp.broadcast_to(jnp.sin(arg_y)[:, None], (H, W)),  # c % 4 == 0
            jnp.broadcast_to(jnp.cos(arg_y)[:, None], (H, W)),  # c % 4 == 1
            jnp.broadcast_to(jnp.sin(arg_x)[None, :], (H, W)),  # c % 4 == 2
            jnp.broadcast_to(jnp.cos(arg_x)[None, :], (H, W)),  # c % 4 == 3
        ]
    )
    return slabs[jnp.arange(C) % 4]  # (C, H, W)


# ---------------------------------------------------------------------------
# Layout / VMEM-budget helpers.
# ---------------------------------------------------------------------------
def _vmem_budget_and_limit():
    """(per-buffer tile budget, scoped vmem limit) by TPU generation."""
    cap = None
    try:
        cap = getattr(pltpu.get_tpu_info(), "vmem_capacity_bytes", None)
    except Exception:
        cap = None
    if cap is not None and cap >= (100 << 20):   # v5e / v6e: 128 MiB VMEM
        return 4 << 20, 64 << 20
    return 2 << 20, 32 << 20                     # v7x (64 MiB / TC) or unknown


def _choose_2d_layout(N):
    """Factor N == R * L, L a multiple of 128 (lanes), R on sublanes."""
    # Prefer R a multiple of 8 (full sublane occupancy) with the largest lane
    # width <= 2048, then any R >= 8, then the max-R fallback.
    for L in range(2048, 127, -128):
        if N % L == 0 and (N // L) % 8 == 0:
            return N // L, L
    for L in range(2048, 127, -128):
        if N % L == 0 and (N // L) >= 8:
            return N // L, L
    return N // 128, 128


def _lane_block(lane, itemsize, budget, sub):
    """Full lane extent unless even a minimal row-group exceeds the budget."""
    if lane < 128 or sub * lane * itemsize <= budget:
        return lane
    return int(max(128, (budget // (sub * itemsize)) // 128 * 128))


def _row_block(rows, lane_blk, itemsize, budget, sub):
    """Largest sublane-quantum multiple of rows fitting the budget (or full)."""
    if rows * lane_blk * itemsize <= budget:
        return rows
    r = (budget // (lane_blk * itemsize)) // sub * sub
    return int(min(rows, max(sub, r)))


# ---------------------------------------------------------------------------
# Wrapper
# ---------------------------------------------------------------------------
def positional_encoding_2d(x, *, donate_x=False, max_block_bytes=None):
    """x: (B, C, H, W) float array. Returns x + pos_enc (PositionalEncoding2D)."""
    B, C, H, W = x.shape
    if C < 4:
        # PyTorch leaves pos_enc at zero -> output == input. No kernel launch.
        return x

    budget, vmem_limit = _vmem_budget_and_limit()
    if max_block_bytes is not None:
        budget = int(max_block_bytes)

    itemsize = jnp.dtype(x.dtype).itemsize
    sub = 8 * max(1, 4 // itemsize)          # sublane quantum: f32->8, bf16->16

    N = C * H * W
    if N % 128 == 0:
        # Lane-dense layout with full sublane occupancy, independent of C.
        R, LANE = _choose_2d_layout(N)
    else:
        # Fallback: keep (C, H*W); full H*W lane extent is legal at any size.
        R, LANE = C, H * W

    pe = _pe_table(C, H, W).astype(x.dtype).reshape(1, R, LANE)
    x_r = x.reshape(B, R, LANE)              # contiguous reshape, same order as pe

    l_blk = _lane_block(LANE, itemsize, budget, sub)
    r_blk = _row_block(R, l_blk, itemsize, budget, sub)
    grid = (pl.cdiv(R, r_blk), pl.cdiv(LANE, l_blk), B)

    blk = (None, r_blk, l_blk)
    out = pl.pallas_call(
        _add_pe_kernel,
        out_shape=jax.ShapeDtypeStruct((B, R, LANE), x.dtype),
        grid=grid,  # batch innermost -> PE block index constant, no re-DMA
        in_specs=[
            pl.BlockSpec(blk, lambda r, l, b: (b, r, l)),
            pl.BlockSpec(blk, lambda r, l, b: (0, r, l)),
        ],
        out_specs=pl.BlockSpec(blk, lambda r, l, b: (b, r, l)),
        compiler_params=pltpu.CompilerParams(
            dimension_semantics=("parallel", "parallel", "parallel"),
            vmem_limit_bytes=vmem_limit,
        ),
        input_output_aliases={0: 0} if donate_x else {},
    )(x_r, pe)

    return out.reshape(B, C, H, W)


# ---------------------------------------------------------------------------
# Pure-JAX reference (transcription of the PyTorch forward) for verification.
# ---------------------------------------------------------------------------
def _reference(x):
    B, C, H, W = x.shape
    y_pos = jnp.arange(H, dtype=jnp.float32)[:, None]
    x_pos = jnp.arange(W, dtype=jnp.float32)[None, :]
    max_dim = max(H, W)
    div = jnp.exp(
        jnp.arange(max_dim, dtype=jnp.float32) * (-math.log(10000.0) / max_dim)
    )
    div_y = div[:H][:, None]
    div_x = div[:W][None, :]
    pe = jnp.zeros((C, H, W), jnp.float32)
    if C >= 4:
        for c in range(C):
            m = c % 4
            if m == 0:
                p = jnp.broadcast_to(jnp.sin(y_pos * div_y), (H, W))
            elif m == 1:
                p = jnp.broadcast_to(jnp.cos(y_pos * div_y), (H, W))
            elif m == 2:
                p = jnp.broadcast_to(jnp.sin(x_pos * div_x), (H, W))
            else:
                p = jnp.broadcast_to(jnp.cos(x_pos * div_x), (H, W))
            pe = pe.at[c].set(p)
    return (x.astype(jnp.float32) + pe[None]).astype(x.dtype)


if __name__ == "__main__":
    # PositionalEncoding2D has no learnable parameters (d_model unused in forward).
    key = jax.random.PRNGKey(0)

    # 1) Main shape: lane-dense (8,128) layout, whole slab per batch.
    B, C, H, W = 2, 4, 16, 16
    x = jax.random.normal(key, (B, C, H, W), dtype=jnp.float32)
    ref = _reference(x)
    out = jax.block_until_ready(positional_encoding_2d(x))
    assert out.shape == (B, C, H, W) and out.dtype == x.dtype
    assert jnp.allclose(out, ref, atol=1e-5, rtol=1e-5)

    # 1b) Same shape with x -> out aliasing enabled (donation path).
    out_d = jax.block_until_ready(positional_encoding_2d(x, donate_x=True))
    assert jnp.allclose(out_d, ref, atol=1e-5, rtol=1e-5)

    # 2) Non-128-divisible fallback path, C not a multiple of 4.
    x2 = jax.random.normal(key, (2, 5, 9, 10), dtype=jnp.float32)
    out2 = jax.block_until_ready(positional_encoding_2d(x2))
    assert jnp.allclose(out2, _reference(x2), atol=1e-5, rtol=1e-5)

    # 3) Force row-axis tiling (small budget) on the lane-dense layout.
    x3 = jax.random.normal(key, (2, 16, 32, 64), dtype=jnp.float32)
    out3 = jax.block_until_ready(positional_encoding_2d(x3, max_block_bytes=64 << 10))
    assert jnp.allclose(out3, _reference(x3), atol=1e-5, rtol=1e-5)

    # 4) Force lane-axis tiling with a ragged last block on the fallback layout.
    x4 = jax.random.normal(key, (1, 4, 3, 100), dtype=jnp.float32)
    out4 = jax.block_until_ready(positional_encoding_2d(x4, max_block_bytes=4096))
    assert jnp.allclose(out4, _reference(x4), atol=1e-5, rtol=1e-5)

    # 5) Channels < 4: module adds an all-zero encoding -> wrapper returns x.
    x5 = jax.random.normal(key, (2, 3, 16, 16), dtype=jnp.float32)
    out5 = jax.block_until_ready(positional_encoding_2d(x5))
    assert jnp.allclose(out5, x5)

    print("KERNEL_OK")
</pallas_src>

<mosaic_0001>
module attributes {stable_mosaic.version = 11 : i64} {
  func.func @_add_pe_kernel(%arg0: i32, %arg1: i32, %arg2: i32, %arg3: memref<1x8x128xf32, #tpu.memory_space<vmem>>, %arg4: memref<1x8x128xf32, #tpu.memory_space<vmem>>, %arg5: memref<1x8x128xf32, #tpu.memory_space<vmem>>) attributes {dimension_semantics = [#tpu.dimension_semantics<parallel>, #tpu.dimension_semantics<parallel>, #tpu.dimension_semantics<parallel>], iteration_bounds = array<i64: 1, 1, 2>, scalar_prefetch = 0 : i64, scratch_operands = 0 : i64, tpu.core_type = #tpu.core_type<tc>, window_params = [{transform_indices = @transform_0, window_bounds = array<i64: 1, 8, 128>}, {transform_indices = @transform_1, window_bounds = array<i64: 1, 8, 128>}, {transform_indices = @transform_2, window_bounds = array<i64: 1, 8, 128>}]} {
    %c0 = arith.constant 0 : index
    %c0_0 = arith.constant 0 : index
    %c0_1 = arith.constant 0 : index
    %0 = vector.load %arg3[%c0, %c0_0, %c0_1] : memref<1x8x128xf32, #tpu.memory_space<vmem>>, vector<1x8x128xf32>
    %1 = vector.shape_cast %0 : vector<1x8x128xf32> to vector<8x128xf32>
    %c0_2 = arith.constant 0 : index
    %c0_3 = arith.constant 0 : index
    %c0_4 = arith.constant 0 : index
    %2 = vector.load %arg4[%c0_2, %c0_3, %c0_4] : memref<1x8x128xf32, #tpu.memory_space<vmem>>, vector<1x8x128xf32>
    %3 = vector.shape_cast %2 : vector<1x8x128xf32> to vector<8x128xf32>
    %4 = arith.addf %1, %3 : vector<8x128xf32>
    %c0_5 = arith.constant 0 : index
    %c0_6 = arith.constant 0 : index
    %c0_7 = arith.constant 0 : index
    %5 = vector.load %arg5[%c0_5, %c0_6, %c0_7] : memref<1x8x128xf32, #tpu.memory_space<vmem>>, vector<1x8x128xf32>
    %6 = vector.shape_cast %5 : vector<1x8x128xf32> to vector<8x128xf32>
    %7 = vector.shape_cast %4 : vector<8x128xf32> to vector<1x8x128xf32>
    tpu.vector_store %arg5[%c0_5, %c0_6, %c0_7], %7 {strides = array<i32>} : memref<1x8x128xf32, #tpu.memory_space<vmem>>, vector<1x8x128xf32>,
    return
  }
  func.func @transform_0(%arg0: i32, %arg1: i32, %arg2: i32) -> (i32, i32, i32) {
    %c0_i32 = arith.constant 0 : i32
    return %arg2, %arg0, %arg1 : i32, i32, i32
  }
  func.func @transform_1(%arg0: i32, %arg1: i32, %arg2: i32) -> (i32, i32, i32) {
    %c0_i32 = arith.constant 0 : i32
    %c0_i32_0 = arith.constant 0 : i32
    return %c0_i32, %arg0, %arg1 : i32, i32, i32
  }
  func.func @transform_2(%arg0: i32, %arg1: i32, %arg2: i32) -> (i32, i32, i32) {
    %c0_i32 = arith.constant 0 : i32
    return %arg2, %arg0, %arg1 : i32, i32, i32
  }
}

</mosaic_0001>

<bundles_post_ra>
// kernel: tpu_custom_call.1
= control target key start
LH: loop header
LB: loop body
LE: loop exit
PB: predicated region body
PF: predicated region fallthrough
CT: control target
= control target key end

     0   :  { %7 = vsyncpa [#allocation3], 0  ;;  %s736_s0 = inlined_call_operand.hbm [shape: f32[2,8,128], index: 0, kind: input, shape index: {}]   ;;  %s737_s1 = inlined_call_operand.hbm [shape: f32[1,8,128], index: 1, kind: input, shape index: {}]   ;;  %s738_s2 = inlined_call_operand.hbm [shape: f32[2,8,128], index: 2, kind: output, shape index: {}]  }
   0x1   :  { %9 = vsyncpa [#allocation3 + $0x1], 0 }
   0x2   :  { %10 = vsyncpa [#allocation6], 0 }
   0x3   :  { %11 = vsyncpa [#allocation4], 0 }
   0x4   :  { %13 = vsyncpa [#allocation4 + $0x1], 0  ;;  %s587_s9 = smov 0   ;;  %s589_s10 = smov 0  }
   0x5   :  { %s591_s11 = smov 0   ;;  %s593_s12 = smov 0  }
   0x6   :  { %s595_s13 = smov 0   ;;  %s597_s14 = smov 0  }
   0x7 LB: > { %s335_s15 = sadd.s32 4294967295, %s569_s14   ;;  %s336_s16 = sadd.s32 4294967294, %s569_s14   ;;  %s569_s14 = sphi %s597_s14, %s19_s14   ;;  %s565_s13 = sphi %s595_s13, %s750_s13   ;;  %s561_s12 = sphi %s593_s12, %s749_s12   ;;  %s557_s11 = sphi %s591_s11, %s748_s11   ;;  %s553_s10 = sphi %s589_s10, %s747_s10   ;;  %s549_s9 = sphi %s587_s9, %s746_s9  }
   0x8   : > { %p62_p0 = scmp.ne.s32.totalorder %s553_s10, %s549_s9  ;;  %p621_p1 = scmp.eq.s32.totalorder %s335_s15, 0 }
   0x9   : > { %p625_p2 = scmp.eq.s32.totalorder %s335_s15, 1  ;;  %p124_p3 = scmp.eq.s32.totalorder %s336_s16, 1 }
   0xa   : > { %p631_p4 = por %p621_p1, %p62_p0  ;;  %p337_p5 = scmp.ge.s32.totalorder %s569_s14, 1 }
   0xb   : > { %p636_p6 = por %p124_p3, %p62_p0  ;;  %p131_p7 = scmp.lt.s32.totalorder %s569_s14, 3 }
   0xc   : > { %s146_s23 = sshll.u32 %s737_s1, 4  ;;  %p339_p9 = scmp.ge.s32.totalorder %s569_s14, 2  ;;  %s147_s23 = int_to_ptr.hbm [resolvable:$true] %s146_s23 }
   0xd   : > { %p644_p8 = pnand %p337_p5, %p131_p7  ;;  %s571_s25 = smov [#allocation5]  }
   0xe   : > { %s148_s26 = sshll.u32 %s571_s25, 4  ;;  %s31_s27 = sadd.s32 1, %s565_s13  ;;  %s149_s26 = int_to_ptr.vmem [resolvable:$true] %s148_s26 }
   0xf   : > { %p358_p10 = pneg %p644_p8  ;;  %p32_p12 = scmp.ge.s32.totalorder %s31_s27, 2 }
  0x10   : > { %s49_s28 = sadd.s32 1, %s557_s11  ;;  %p56_p13 = scmp.ne.s32.totalorder %s557_s11, %s553_s10 }
  0x11   : > { %p359_p11 = pnand %p358_p10, %p621_p1  ;;  %p57_p0 = scmp.eq.s32.totalorder %s569_s14, 0 }
  0x12   : > { %s752_s27 = smov (%p32_p12, %s31_s27), 0  ;;  %p666_p5 = por %p625_p2, %p56_p13 }
  0x13   : > { %361 = dma.hbm_to_vmem [thread:$0]  (!%p359_p11), %s147_s23, 128, %s149_s26, [#allocation6]  }
  0x14   : > { %p660_p3 = por %p57_p0, %p56_p13  ;;  %s42_s3 = ssub.s32 %s565_s13, %s752_s27 }
  0x15   : > { %p371_p7 = scmp.lt.s32.totalorder %s569_s14, 2  ;;  %p47_p10 = scmp.eq.s32.totalorder %s42_s3, 0 }
  0x16   : > { %s159_s4 = sand.u32 1, %s557_s11   ;;  %s341_s7 = sshll.u32 %s565_s13, 3 }
  0x17   : > { %s340_s5 = sshll.u32 %s159_s4, 3  ;;  %s169_s16 = scalar_lea.hbm %s736_s0, %s341_s7 }
  0x18   : > { %s675_s6 = scalar_select %p47_p10, %s557_s11, %s49_s28  }
  0x19   : > { %s163_s21 = scalar_lea.vmem [#allocation2], %s340_s5  ;;  %s171_s18 = sshll.u32 %s169_s16, 4  ;;  %s172_s18 = int_to_ptr.hbm [resolvable:$true] %s171_s18 }
  0x1a   : > { %s173_s22 = sshll.u32 %s163_s21, 4  ;;  %p363_p2 = pnand %p371_p7, %p660_p3  ;;  %s174_s22 = int_to_ptr.vmem [resolvable:$true] %s173_s22 }
  0x1b   : > { %s160_s23 = scalar_lea.sflag [#allocation3], %s159_s4  ;;  %182 = sbr.rel (%p644_p8) target bundleno = 50 (0x32), region = 28 }
  0x1c   : > { %365 = dma.hbm_to_vmem [thread:$0]  (!%p363_p2), %s172_s18, 128, %s174_s22, %s160_s23  }
  0x1d   : > { %s686_s25 = sand.u32 (!%p644_p8), 1, %s553_s10  }
  0x1e   : > { %s343_s26 = sshll.u32 (!%p644_p8), %s686_s25, 3  ;;  %s185_s28 = scalar_lea.sflag (!%p644_p8), [#allocation3], %s686_s25 }
  0x1f   : > { %s188_s3 = scalar_lea.vmem (!%p644_p8), [#allocation2], %s343_s26 }
  0x20   : > { %536 = dma.done.wait (%p631_p4), %s185_s28, 128  }
  0x21   : > { %538 = vsyncadd (%p631_p4), %s185_s28, 4294967168 }
  0x22   : > { %540 = dma.done.wait (%p621_p1), [#allocation6], 128  }
  0x23   : > { %542 = vsyncadd (%p621_p1), [#allocation6], 4294967168  ;;  %s347_s24 = sshll.u32 %s561_s12, 3  ;;  %s214_s7 = scalar_lea.vmem [#allocation7], %s343_s26  ;;  %v215_v0 = vld [vmem:[%s188_s3] sm:$0xff]  ;;  %v216_v1 = vld [vmem:[#allocation5] sm:$0xff] }
  0x24   : > { %s232_s5 = scalar_lea.hbm %s738_s2, %s347_s24  ;;  %s234_s8 = sshll.u32 %s214_s7, 4  ;;  %v217_v2 = vadd.f32 %v216_v1, %v215_v0  ;;  %s235_s8 = int_to_ptr.vmem [resolvable:$true] %s234_s8 }
  0x25   : > { %s236_s15 = sshll.u32 %s232_s5, 4  ;;  %s220_s19 = scalar_lea.sflag [#allocation4], %s686_s25  ;;  %s237_s15 = int_to_ptr.hbm [resolvable:$true] %s236_s15 }
  0x26   : > { %218 = vst [vmem:[%s214_s7] sm:$0xff] %v217_v2  ;;  %s497_s17 = sshra.s32 %s237_s15, 4  ;;  %s503_s22 = scalar_lea.hbm %s738_s2, 16  ;;  %s498_s17 = int_to_ptr.hbm [resolvable:$true] %s497_s17 }
  0x27   : > { %s499_s16 = scalar_lea.hbm %s498_s17, 8  ;;  %p504_p11 = scmp.lt.s32.totalorder %s498_s17, %s738_s2 }
  0x28   : > { %p500_p1 = scmp.ne.s32.totalorder %s498_s17, %s499_s16  ;;  %p505_p12 = scmp.lt.s32.totalorder %s503_s22, %s499_s16 }
  0x2a   : > { %p501_p4 = pnand %p500_p1, %p666_p5  ;;  %p506_p13 = por %p505_p12, %p504_p11 }
  0x2c   : > { %p502_p8 = pneg %p501_p4 }
  0x2e   : > { %p507_p0 = pnand %p506_p13, %p502_p8 }
  0x30   : > { %510 = shalt.err (!%p507_p0)
}
  0x31   : > { %356 = dma.vmem_to_hbm [thread:$0]  (%p666_p5), %s235_s8, 128, %s237_s15, %s220_s19  }
  0x32 PF: > { %s248_s25 = sand.u32 1, %s549_s9   ;;  %p367_p3 = pnand %p339_p9, %p636_p6 }
  0x33   : > { %s249_s26 = scalar_lea.sflag [#allocation4], %s248_s25 }
  0x34   : > { %p368_p7 = pneg %p367_p3 }
  0x36   : > { %544 = dma.done.wait (%p368_p7), %s249_s26, 128  }
  0x37   : > { %546 = vsyncadd (%p368_p7), %s249_s26, 4294967168  ;;  %s19_s14 = sadd.s32 1, %s569_s14   ;;  %s746_s9 = smov %s553_s10 }
  0x38   : > { %p16_p10 = scmp.ge.s32.totalorder %s19_s14, 4   ;;  %s747_s10 = smov %s557_s11 }
  0x39   : > { %s748_s11 = smov %s675_s6  ;;  %s749_s12 = smov %s565_s13 }
  0x3a   : > { %s750_s13 = smov %s752_s27  ;;  %18 = sbr.rel (!%p16_p10) target bundleno = 7 (0x7), region = 78 }
  0x3f   :  { %255 = vsyncpa [#allocation3], 1 }
  0x40   :  { %257 = vsyncpa [#allocation3 + $0x1], 1 }
  0x41   :  { %258 = vsyncpa [#allocation6], 1 }
  0x42   :  { %259 = vsyncpa [#allocation4], 1 }
  0x43   :  { %261 = vsyncpa [#allocation4 + $0x1], 1 }

</bundles_post_ra>
